<compile_context>
chip_gen: v6e
topology: v6e:2x2x1
jax: 0.10.0
libtpu: 0.0.40
codegen_flags: <defaults>
</compile_context>

<pallas_src>
from functools import lru_cache

import numpy as np
import jax
import jax.numpy as jnp
from jax.experimental import pallas as pl
from jax.experimental.pallas import tpu as pltpu


def _pick_block_batch(B, C, per_image_bytes):
    """Batch tile: fill an MXU pass (TB*C ~ 256 rows) without blowing VMEM."""
    max_tb = max(1, 256 // max(C, 1))                       # M = TB*C ~ 256
    max_tb = min(max_tb, max(1, (4 << 20) // max(per_image_bytes, 1)))
    tb = min(B, max_tb)
    # Prefer >= 2 grid steps (v7x megacore sharding) only when each half of
    # the batch still fills at least one 128-row MXU pass.
    if tb == B and B > 1 and ((B + 1) // 2) * C >= 128:
        tb = (B + 1) // 2
    return tb


@lru_cache(maxsize=None)
def _selection_matrix(H, W, dtype_name):
    """0/1 matrix S with S[(2h)*W + 2w, h*W2 + w] = 1 (stride-2 H/W gather)."""
    H2, W2 = -(-H // 2), -(-W // 2)
    src = (2 * W) * np.arange(H2, dtype=np.int64)[:, None] \
        + 2 * np.arange(W2, dtype=np.int64)[None, :]                 # (H2, W2)
    sel = (np.arange(H * W, dtype=np.int64)[:, None] == src.reshape(1, -1))
    return jnp.asarray(sel.astype(dtype_name))                       # (HW, HW4)


def _make_kernel(TB, C, pad, HW, HW4, precision):
    def kernel(x_ref, s_ref, o_ref):
        # x_ref : (TB, C, H*W)        lane-dense input tile
        # s_ref : (H*W, H2*W2)        0/1 downsample-selection matrix
        # o_ref : (TB, C_out, H2*W2)  lane-dense output tile
        if pad > 0:
            zeros = jnp.zeros((TB, pad, HW4), dtype=o_ref.dtype)
            o_ref[:, :pad, :] = zeros            # low pad channels
            o_ref[:, pad + C:, :] = zeros        # high pad channels
        # One fused selection matmul: fold the batch tile into M so MXU passes
        # are full and the result-FIFO drain is amortized (merging leading
        # dims of a loaded value is a free relayout).
        xm = x_ref[...].reshape(TB * C, HW)
        ds = jnp.dot(xm, s_ref[...],
                     preferred_element_type=jnp.float32,
                     precision=precision)
        o_ref[:, pad:pad + C, :] = ds.reshape(TB, C, HW4).astype(o_ref.dtype)

    return kernel


def lambda_layer_shortcut(x, planes):
    """Pallas implementation of the ResNet-20 option-A shortcut LambdaLayer.

    x      : (B, C, H, W) array (NCHW)
    planes : target channel count; pad = planes // 4 zeros per side.
    Returns (B, C + 2*pad, ceil(H/2), ceil(W/2)).
    """
    B, C, H, W = x.shape
    pad = planes // 4
    H2, W2 = -(-H // 2), -(-W // 2)              # ceil, matches x[:, :, ::2, ::2]
    HW, HW4 = H * W, H2 * W2
    C_out = C + 2 * pad
    itemsize = jnp.dtype(x.dtype).itemsize

    TB = _pick_block_batch(B, C, (C * HW + C_out * HW4) * itemsize)
    grid_b = pl.cdiv(B, TB)
    B_pad = grid_b * TB

    # Guarantee the selection matmul is an exact copy for f32 inputs.
    precision = jax.lax.Precision.HIGHEST if x.dtype == jnp.float32 else None
    kernel = _make_kernel(TB, C, pad, HW, HW4, precision)

    # Free layout plumbing: flatten spatial dims so the lane axis is wide.
    x_flat = x.reshape(B, C, HW)
    if B_pad != B:
        # Pad awkward batch sizes instead of collapsing TB to 1.
        x_flat = jnp.pad(x_flat, ((0, B_pad - B), (0, 0), (0, 0)))

    sel = _selection_matrix(H, W, np.dtype(x.dtype).name)

    # VMEM budget: double-buffered in/out tiles + the resident S buffers.
    tile_bytes = 2 * (TB * C * HW + TB * C_out * HW4) * itemsize
    sel_bytes = 2 * HW * HW4 * itemsize
    vmem_limit = int(min(64 << 20, max(16 << 20, 2 * (tile_bytes + sel_bytes))))

    out_flat = pl.pallas_call(
        kernel,
        out_shape=jax.ShapeDtypeStruct((B_pad, C_out, HW4), x.dtype),
        grid_spec=pltpu.PrefetchScalarGridSpec(
            num_scalar_prefetch=0,
            grid=(grid_b,),
            in_specs=[
                pl.BlockSpec((TB, C, HW), lambda b: (b, 0, 0)),
                # constant block index -> stays resident, fetched once
                pl.BlockSpec((HW, HW4), lambda b: (0, 0)),
            ],
            out_specs=pl.BlockSpec((TB, C_out, HW4), lambda b: (b, 0, 0)),
        ),
        compiler_params=pltpu.CompilerParams(
            dimension_semantics=("parallel",),
            vmem_limit_bytes=vmem_limit),
        cost_estimate=pl.CostEstimate(
            flops=2 * B_pad * C * HW * HW4,
            transcendentals=0,
            bytes_accessed=(B_pad * C * HW + HW * HW4 + B_pad * C_out * HW4)
            * itemsize),
    )(x_flat, sel)

    return out_flat[:B].reshape(B, C_out, H2, W2)


def _reference(x, planes):
    """Pure-JAX reference mirroring the PyTorch lambda."""
    pad = planes // 4
    ds = x[:, :, ::2, ::2]
    return jnp.pad(ds, ((0, 0), (pad, pad), (0, 0), (0, 0)))


if __name__ == "__main__":
    key = jax.random.PRNGKey(0)
    B, C, H, W = 2, 4, 16, 16
    planes = 2 * C  # standard ResNet-20 usage: downsample doubles channels

    x = jax.random.normal(key, (B, C, H, W), dtype=jnp.float32)

    y = lambda_layer_shortcut(x, planes)
    y = jax.block_until_ready(y)

    y_ref = _reference(x, planes)
    assert y.shape == (B, planes, H // 2, W // 2), y.shape
    assert jnp.allclose(y, y_ref), "mismatch vs reference"

    print("KERNEL_OK")
</pallas_src>

<mosaic_0001>
module attributes {stable_mosaic.version = 11 : i64} {
  func.func @kernel(%arg0: i32, %arg1: memref<2x4x256xf32, #tpu.memory_space<vmem>>, %arg2: memref<256x64xf32, #tpu.memory_space<vmem>>, %arg3: memref<2x8x64xf32, #tpu.memory_space<vmem>>) attributes {dimension_semantics = [#tpu.dimension_semantics<parallel>], iteration_bounds = array<i64: 1>, scalar_prefetch = 0 : i64, scratch_operands = 0 : i64, tpu.core_type = #tpu.core_type<tc>, window_params = [{transform_indices = @transform_0, window_bounds = array<i64: 2, 4, 256>}, {pipeline_mode = #tpu.pipeline_mode<synchronous>, transform_indices = @transform_1, window_bounds = array<i64: 256, 64>}, {transform_indices = @transform_2, window_bounds = array<i64: 2, 8, 64>}]} {
    %cst = arith.constant 0.000000e+00 : f32
    %0 = vector.broadcast %cst : f32 to vector<2x2x64xf32>
    %c0 = arith.constant 0 : index
    %c0_0 = arith.constant 0 : index
    %c0_1 = arith.constant 0 : index
    %1 = vector.load %arg3[%c0, %c0_0, %c0_1] : memref<2x8x64xf32, #tpu.memory_space<vmem>>, vector<2x2x64xf32>
    tpu.vector_store %arg3[%c0, %c0_0, %c0_1], %0 {strides = array<i32>} : memref<2x8x64xf32, #tpu.memory_space<vmem>>, vector<2x2x64xf32>,
    %c0_2 = arith.constant 0 : index
    %c6 = arith.constant 6 : index
    %c0_3 = arith.constant 0 : index
    %2 = vector.load %arg3[%c0_2, %c6, %c0_3] : memref<2x8x64xf32, #tpu.memory_space<vmem>>, vector<2x2x64xf32>
    tpu.vector_store %arg3[%c0_2, %c6, %c0_3], %0 {strides = array<i32>} : memref<2x8x64xf32, #tpu.memory_space<vmem>>, vector<2x2x64xf32>,
    %c0_4 = arith.constant 0 : index
    %c0_5 = arith.constant 0 : index
    %c0_6 = arith.constant 0 : index
    %3 = vector.load %arg1[%c0_4, %c0_5, %c0_6] : memref<2x4x256xf32, #tpu.memory_space<vmem>>, vector<2x4x256xf32>
    %4 = vector.shape_cast %3 : vector<2x4x256xf32> to vector<8x256xf32>
    %c0_7 = arith.constant 0 : index
    %c0_8 = arith.constant 0 : index
    %5 = vector.load %arg2[%c0_7, %c0_8] : memref<256x64xf32, #tpu.memory_space<vmem>>, vector<256x64xf32>
    %cst_9 = arith.constant dense<0.000000e+00> : vector<8x64xf32>
    %6 = tpu.matmul %4, %5, %cst_9 {dimension_numbers = #tpu.dot_dimension_numbers<[1], [0], [0], [1], [0, 0, 1, 1], [], []>, precision = #tpu.contract_precision<fp32>} : vector<8x256xf32>, vector<256x64xf32>, vector<8x64xf32> -> vector<8x64xf32>
    %7 = vector.shape_cast %6 : vector<8x64xf32> to vector<2x4x64xf32>
    %c0_10 = arith.constant 0 : index
    %c2 = arith.constant 2 : index
    %c0_11 = arith.constant 0 : index
    %8 = vector.load %arg3[%c0_10, %c2, %c0_11] : memref<2x8x64xf32, #tpu.memory_space<vmem>>, vector<2x4x64xf32>
    tpu.vector_store %arg3[%c0_10, %c2, %c0_11], %7 {strides = array<i32>} : memref<2x8x64xf32, #tpu.memory_space<vmem>>, vector<2x4x64xf32>,
    return
  }
  func.func @transform_0(%arg0: i32) -> (i32, i32, i32) {
    %c0_i32 = arith.constant 0 : i32
    %c0_i32_0 = arith.constant 0 : i32
    %c0_i32_1 = arith.constant 0 : i32
    return %arg0, %c0_i32, %c0_i32_0 : i32, i32, i32
  }
  func.func @transform_1(%arg0: i32) -> (i32, i32) {
    %c0_i32 = arith.constant 0 : i32
    %c0_i32_0 = arith.constant 0 : i32
    %c0_i32_1 = arith.constant 0 : i32
    return %c0_i32, %c0_i32_0 : i32, i32
  }
  func.func @transform_2(%arg0: i32) -> (i32, i32, i32) {
    %c0_i32 = arith.constant 0 : i32
    %c0_i32_0 = arith.constant 0 : i32
    %c0_i32_1 = arith.constant 0 : i32
    return %arg0, %c0_i32, %c0_i32_0 : i32, i32, i32
  }
}

</mosaic_0001>

<bundles_post_ra>
// kernel: tpu_custom_call.1
= control target key start
LH: loop header
LB: loop body
LE: loop exit
PB: predicated region body
PF: predicated region fallthrough
CT: control target
= control target key end

     0   :  { %s1906_s0 = inlined_call_operand.vmem [shape: f32[2,4,256], index: 0, kind: input, shape index: {}]   ;;  %s1907_s1 = inlined_call_operand.vmem [shape: f32[256,64], index: 1, kind: input, shape index: {}]   ;;  %s1908_s2 = inlined_call_operand.hbm [shape: f32[2,8,64], index: 2, kind: output, shape index: {}]  }
   0x1   :  { %v50_v0 = vld [vmem:[%s1907_s1 + $0xf8] sm:$0xff]  ;;  %v49_v2 = vld [vmem:[%s1907_s1 + $0xf0] sm:$0xff]  ;;  %v48_v7 = vld [vmem:[%s1907_s1 + $0xe8] sm:$0xff] }
   0x2   :  { %v34_v1 = vld [vmem:[%s1907_s1 + $0x78] sm:$0xff]  ;;  %v1208_v3 = vand.u32 4294901760, %v50_v0  ;;  %v1212_v5 = vand.u32 4294901760, %v49_v2  ;;  %v33_v6 = vld [vmem:[%s1907_s1 + $0x70] sm:$0xff]  ;;  %v32_v8 = vld [vmem:[%s1907_s1 + $0x68] sm:$0xff]  ;;  %v1225_v10 = vand.u32 4294901760, %v48_v7 }
   0x3   :  { %v1210_v4 = vand.u32 4294901760, %v34_v1  ;;  %v1223_v9 = vand.u32 4294901760, %v33_v6  ;;  %v1227_v11 = vand.u32 4294901760, %v32_v8  ;;  %v47_v12 = vld [vmem:[%s1907_s1 + $0xe0] sm:$0xff]  ;;  %v46_v14 = vld [vmem:[%s1907_s1 + $0xd8] sm:$0xff]  ;;  %v1256_v20 = vld [vmem:[%s1907_s1 + $0xd0] sm:$0xff] }
   0x4   :  { %v31_v13 = vld [vmem:[%s1907_s1 + $0x60] sm:$0xff]  ;;  %941 = vmatprep.subr.mxu0 %v1208_v3  ;;  %v1239_v15 = vand.u32 4294901760, %v47_v12  ;;  %v1243_v17 = vand.u32 4294901760, %v46_v14  ;;  %v1246_v18 = vsub.f32 %v50_v0, %v1208_v3  ;;  %v1251_v19 = vld [vmem:[%s1907_s1 + $0x58] sm:$0xff]  ;;  %v1261_v21 = vld [vmem:[%s1907_s1 + $0x50] sm:$0xff]  ;;  %v1271_v24 = vand.u32 4294901760, %v1256_v20 }
   0x5   :  { %v1241_v16 = vand.u32 4294901760, %v31_v13  ;;  %942 = vmatpush3.msra.mxu0 %v1210_v4  ;;  %v1265_v22 = vand.u32 4294901760, %v1251_v19  ;;  %v1268_v23 = vsub.f32 %v34_v1, %v1210_v4  ;;  %v1274_v25 = vsub.f32 %v49_v2, %v1212_v5  ;;  %v1279_v26 = vld [vmem:[%s1907_s1 + $0xc8] sm:$0xff]  ;;  %v1289_v28 = vld [vmem:[%s1907_s1 + $0xc0] sm:$0xff]  ;;  %v1341_v46 = vld [vmem:[%s1907_s1 + $0xb8] sm:$0xff] }
   0x6   :  { %1978 = vst [vmem:[#allocation5_spill] sm:$0xff] %v1271_v24  ;;  %v1284_v27 = vld [vmem:[%s1907_s1 + $0x48] sm:$0xff]  ;;  %943 = vmatprep.subr.mxu0 %v1212_v5  ;;  %v1922_v29 = vand.u32 4294901760, %v1246_v18  ;;  %v1294_v30 = vand.u32 4294901760, %v1261_v21  ;;  %v1297_v31 = vsub.f32 %v33_v6, %v1223_v9  ;;  %v1300_v32 = vand.u32 4294901760, %v1279_v26  ;;  %v1314_v37 = vld [vmem:[%s1907_s1 + $0x40] sm:$0xff] }
   0x7   :  { %944 = vmatpush3.msra.mxu0 %v1223_v9  ;;  %v1921_v33 = vand.u32 4294901760, %v1268_v23  ;;  %v1919_v34 = vand.u32 4294901760, %v1274_v25  ;;  %v1306_v35 = vsub.f32 %v48_v7, %v1225_v10  ;;  %v1309_v36 = vand.u32 4294901760, %v1284_v27  ;;  %v1354_v51 = vld [vmem:[%s1907_s1 + $0x38] sm:$0xff]  ;;  %v1364_v56 = vld [vmem:[%s1907_s1 + $0xb0] sm:$0xff]  ;;  %v1394_v2 = vld [vmem:[%s1907_s1 + $0xa8] sm:$0xff] }
   0x8   :  { %1979 = vst [vmem:[#allocation6_spill] sm:$0xff] %v1294_v30  ;;  %1980 = vst [vmem:[#allocation7_spill] sm:$0xff] %v1300_v32  ;;  %945 = vmatprep.subr.mxu0 %v1225_v10  ;;  %v285_v38 = vsub.f32 %v1246_v18, %v1922_v29  ;;  %v1918_v39 = vand.u32 4294901760, %v1297_v31  ;;  %v1322_v40 = vsub.f32 %v32_v8, %v1227_v11  ;;  %v1325_v41 = vand.u32 4294901760, %v1289_v28  ;;  %v1379_v61 = vld [vmem:[%s1907_s1 + $0x30] sm:$0xff] }
   0x9   :  { %1981 = vst [vmem:[#allocation8_spill] sm:$0xff] %v1309_v36  ;;  %946 = vmatpush3.msra.mxu0 %v1227_v11  ;;  %v173_v42 = vsub.f32 %v1268_v23, %v1921_v33  ;;  %v292_v43 = vsub.f32 %v1274_v25, %v1919_v34  ;;  %v1916_v44 = vand.u32 4294901760, %v1306_v35  ;;  %v1336_v45 = vsub.f32 %v47_v12, %v1239_v15 }
   0xa   :  { %1982 = vst [vmem:[#allocation9_spill] sm:$0xff] %v1325_v41  ;;  %947 = vmatprep.subr.mxu0 %v1239_v15  ;;  %v286_v47 = vand.u32 4294901760, %v285_v38  ;;  %v180_v48 = vsub.f32 %v1297_v31, %v1918_v39  ;;  %v1914_v49 = vand.u32 4294901760, %v1322_v40  ;;  %v1349_v50 = vand.u32 4294901760, %v1314_v37 }
   0xb   :  { %948 = vmatpush3.msra.mxu0 %v1241_v16  ;;  %v174_v52 = vand.u32 4294901760, %v173_v42  ;;  %v293_v53 = vand.u32 4294901760, %v292_v43  ;;  %v299_v54 = vsub.f32 %v1306_v35, %v1916_v44  ;;  %v1913_v55 = vand.u32 4294901760, %v1336_v45 }
   0xc   :  { %1983 = vst [vmem:[#allocation10_spill] sm:$0xff] %v1349_v50  ;;  %949 = vmatprep.subr.mxu0 %v1243_v17  ;;  %976 = vmatprep.subr.mxu1 %v286_v47  ;;  %v181_v57 = vand.u32 4294901760, %v180_v48  ;;  %v187_v58 = vsub.f32 %v1322_v40, %v1914_v49  ;;  %v1371_v59 = vsub.f32 %v31_v13, %v1241_v16  ;;  %v1374_v60 = vand.u32 4294901760, %v1341_v46 }
   0xd   :  { %950 = vmatpush3.msra.mxu0 %v1265_v22  ;;  %977 = vmatpush3.msra.mxu1 %v174_v52  ;;  %v300_v62 = vand.u32 4294901760, %v299_v54  ;;  %v306_v63 = vsub.f32 %v1336_v45, %v1913_v55  ;;  %v1386_v0 = vsub.f32 %v46_v14, %v1243_v17  ;;  %v1389_v1 = vand.u32 4294901760, %v1354_v51 }
   0xe   :  { %1984 = vst [vmem:[#allocation11_spill] sm:$0xff] %v1374_v60 }
   0xf   :  { %1985 = vst [vmem:[#allocation12_spill] sm:$0xff] %v1389_v1 }
  0x10   :  { %7 = vsyncpa [#allocation3], 0  ;;  %951 = vmatprep.subr.mxu0 %v1271_v24  ;;  %978 = vmatprep.subr.mxu1 %v293_v53  ;;  %v188_v6 = vand.u32 4294901760, %v187_v58  ;;  %v1911_v7 = vand.u32 4294901760, %v1371_v59  ;;  %v1400_v8 = vsub.f32 %v1251_v19, %v1265_v22  ;;  %v1403_v12 = vand.u32 4294901760, %v1364_v56  ;;  %v1408_v13 = vld [vmem:[%s1907_s1 + $0x28] sm:$0xff] }
  0x11   :  { %952 = vmatpush3.msra.mxu0 %v1294_v30  ;;  %979 = vmatpush3.msra.mxu1 %v181_v57  ;;  %v307_v14 = vand.u32 4294901760, %v306_v63  ;;  %v1909_v38 = vand.u32 4294901760, %v1386_v0  ;;  %v1414_v42 = vsub.f32 %v1256_v20, %v1271_v24  ;;  %v1417_v19 = vand.u32 4294901760, %v1379_v61  ;;  %v1434_v20 = vld [vmem:[%s1907_s1 + $0xa0] sm:$0xff]  ;;  %v1487_v49 = vld [vmem:[%s1907_s1 + $0x18] sm:$0xff]  ;;  %v1503_v44 = vld [vmem:[%s1907_s1 + $0x90] sm:$0xff] }
  0x12   :  { %1986 = vst [vmem:[#allocation13_spill] sm:$0xff] %v1403_v12  ;;  %953 = vmatprep.subr.mxu0 %v1300_v32  ;;  %980 = vmatprep.subr.mxu1 %v300_v62  ;;  %v194_v43 = vsub.f32 %v1371_v59, %v1911_v7  ;;  %v1910_v47 = vand.u32 4294901760, %v1400_v8  ;;  %v1426_v48 = vsub.f32 %v1261_v21, %v1294_v30  ;;  %v1429_v52 = vand.u32 4294901760, %v1394_v2  ;;  %v1530_v33 = vld [vmem:[%s1907_s1 + $0x88] sm:$0xff] }
  0x13   :  { %1987 = vst [vmem:[#allocation14_spill] sm:$0xff] %v1417_v19  ;;  %954 = vmatpush3.msra.mxu0 %v1309_v36  ;;  %981 = vmatpush3.msra.mxu1 %v188_v6  ;;  %v313_v53 = vsub.f32 %v1386_v0, %v1909_v38  ;;  %v1912_v54 = vand.u32 4294901760, %v1414_v42  ;;  %v1443_v21 = vsub.f32 %v1279_v26, %v1300_v32  ;;  %v1446_v57 = vand.u32 4294901760, %v1408_v13  ;;  %v1460_v26 = vld [vmem:[%s1907_s1 + $0x20] sm:$0xff] }
  0x14   :  { %1988 = vst [vmem:[#allocation15_spill] sm:$0xff] %v1429_v52  ;;  %955 = vmatprep.subr.mxu0 %v1325_v41  ;;  %982 = vmatprep.subr.mxu1 %v307_v14  ;;  %v195_v58 = vand.u32 4294901760, %v194_v43  ;;  %v201_v62 = vsub.f32 %v1400_v8, %v1910_v47  ;;  %v1915_v63 = vand.u32 4294901760, %v1426_v48  ;;  %v1455_v6 = vsub.f32 %v1284_v27, %v1309_v36  ;;  %v1473_v27 = vld [vmem:[%s1907_s1 + $0x98] sm:$0xff] }
  0x15   :  { %1989 = vst [vmem:[#allocation16_spill] sm:$0xff] %v1446_v57  ;;  %956 = vmatpush3.msra.mxu0 %v1349_v50  ;;  %v314_v38 = vand.u32 4294901760, %v313_v53  ;;  %v320_v14 = vsub.f32 %v1414_v42, %v1912_v54  ;;  %v1917_v43 = vand.u32 4294901760, %v1443_v21  ;;  %v1468_v47 = vand.u32 4294901760, %v1434_v20 }
  0x16   :  { %983 = vmatpush3.msra.mxu1 %v195_v58  ;;  %957 = vmatprep.subr.mxu0 %v1374_v60  ;;  %v202_v7 = vand.u32 4294901760, %v201_v62  ;;  %v208_v53 = vsub.f32 %v1426_v48, %v1915_v63  ;;  %v1920_v54 = vand.u32 4294901760, %v1455_v6  ;;  %v1482_v55 = vsub.f32 %v1289_v28, %v1325_v41 }
  0x17   :  { %1990 = vst [vmem:[#allocation17_spill] sm:$0xff] %v1468_v47  ;;  %984 = vmatprep.subr.mxu1 %v314_v38  ;;  %958 = vmatpush3.msra.mxu0 %v1389_v1  ;;  %v321_v58 = vand.u32 4294901760, %v320_v14  ;;  %v327_v62 = vsub.f32 %v1443_v21, %v1917_v43  ;;  %v1494_v63 = vand.u32 4294901760, %v1460_v26  ;;  %v1498_v28 = vsub.f32 %v1314_v37, %v1349_v50  ;;  %v1516_v37 = vld [vmem:[%s1907_s1 + $0x10] sm:$0xff] }
  0x18   :  { %985 = vmatpush3.msra.mxu1 %v202_v7  ;;  %959 = vmatprep.subr.mxu0 %v1403_v12  ;;  %v209_v38 = vand.u32 4294901760, %v208_v53  ;;  %v215_v14 = vsub.f32 %v1455_v6, %v1920_v54  ;;  %v1925_v43 = vand.u32 4294901760, %v1482_v55  ;;  %v1511_v39 = vand.u32 4294901760, %v1473_v27 }
  0x19   :  { %1991 = vst [vmem:[#allocation18_spill] sm:$0xff] %v1494_v63  ;;  %986 = vmatprep.subr.mxu1 %v321_v58  ;;  %960 = vmatpush3.msra.mxu0 %v1417_v19  ;;  %v328_v7 = vand.u32 4294901760, %v327_v62  ;;  %v1926_v53 = vand.u32 4294901760, %v1498_v28  ;;  %v1522_v34 = vsub.f32 %v1341_v46, %v1374_v60  ;;  %v1525_v54 = vand.u32 4294901760, %v1487_v49 }
  0x1a   :  { %987 = vmatpush3.msra.mxu1 %v209_v38  ;;  %961 = vmatprep.subr.mxu0 %v1429_v52  ;;  %v216_v58 = vand.u32 4294901760, %v215_v14  ;;  %v334_v62 = vsub.f32 %v1482_v55, %v1925_v43  ;;  %v1538_v46 = vsub.f32 %v1354_v51, %v1389_v1  ;;  %v1541_v29 = vand.u32 4294901760, %v1503_v44  ;;  %v1558_v51 = vld [vmem:[%s1907_s1 + $0x8] sm:$0xff] }
  0x1b   :  { %1992 = vst [vmem:[#allocation19_spill] sm:$0xff] %v1525_v54  ;;  %988 = vmatprep.subr.mxu1 %v328_v7  ;;  %962 = vmatpush3.msra.mxu0 %v1446_v57  ;;  %v222_v38 = vsub.f32 %v1498_v28, %v1926_v53  ;;  %v1550_v60 = vsub.f32 %v1364_v56, %v1403_v12  ;;  %v1553_v43 = vand.u32 4294901760, %v1516_v37  ;;  %v1567_v56 = vand.u32 4294901760, %v1530_v33  ;;  %v1572_v12 = vld [vmem:[%s1907_s1 + $0x80] sm:$0xff] }
  0x1c   :  { %1993 = vst [vmem:[#allocation20_spill] sm:$0xff] %v1541_v29  ;;  %989 = vmatpush3.msra.mxu1 %v216_v58  ;;  %963 = vmatprep.subr.mxu0 %v1468_v47  ;;  %v335_v7 = vand.u32 4294901760, %v334_v62  ;;  %v1564_v14 = vsub.f32 %v1379_v61, %v1417_v19  ;;  %v1996_v1 = vand.u32 4294901760, %v1522_v34  ;;  %v1581_v61 = vsub.f32 %v1394_v2, %v1429_v52  ;;  %v1598_v2 = vld [vmem:[%s1907_s1] sm:$0xff] }
  0x1d   :  { %1994 = vst [vmem:[#allocation21_spill] sm:$0xff] %v1553_v43  ;;  %1995 = vst [vmem:[#allocation22_spill] sm:$0xff] %v1567_v56  ;;  %964 = vmatpush3.msra.mxu0 %v1494_v63  ;;  %v223_v58 = vand.u32 4294901760, %v222_v38  ;;  %v1945_v53 = vand.u32 4294901760, %v1550_v60  ;;  %v1998_v19 = vand.u32 4294901760, %v1538_v46  ;;  %v1589_v38 = vand.u32 4294901760, %v1558_v51 }
  0x1e   :  { %v341_v62 = vsub.f32 %v1522_v34, %v1996_v1  ;;  %1997 = vst [vmem:[#allocation23_spill] sm:$0xff] %v1581_v61  ;;  %990 = vmatprep.subr.mxu1 %v335_v7  ;;  %965 = vmatprep.subr.mxu0 %v1511_v39  ;;  %v1593_v1 = vsub.f32 %v1408_v13, %v1446_v57  ;;  %v1157_v7 = vld [vmem:[%s1906_s0 + $0x4] ss:$8 sps:$4 sm:$0xff]   ;;  %v1609_v57 = vand.u32 4294901760, %v1572_v12  ;;  %v1155_v52 = vld [vmem:[%s1906_s0] ss:$8 sps:$4 sm:$0xff]  }
  0x1f   :  { %v229_v50 = vsub.f32 %v1538_v46, %v1998_v19  ;;  %991 = vmatpush3.msra.mxu1 %v223_v58  ;;  %966 = vmatpush3.msra.mxu0 %v1525_v54  ;;  %v348_v41 = vsub.f32 %v1550_v60, %v1945_v53  ;;  %v1999_v58 = vand.u32 4294901760, %v1564_v14  ;;  %v1621_v53 = vsub.f32 %v1434_v20, %v1468_v47  ;;  %s1181_s0 = smov [#allocation2]  }
  0x20   :  { %v342_v19 = vand.u32 4294901760, %v341_v62  ;;  %967 = vmatprep.subr.mxu0 %v1541_v29  ;;  %v2000_v30 = vand.u32 4294901760, %v1581_v61  ;;  %v1628_v24 = vand.u32 4294901760, %v1598_v2  ;;  %v2001_v20 = vand.u32 4294901760, %v1593_v1  ;;  %s930_s20 = sshll.u32 %s1181_s0, 4  ;;  %s931_s20 = int_to_ptr.vmem [resolvable:$true] %s930_s20 }
  0x21   :  { %v230_v36 = vand.u32 4294901760, %v229_v50  ;;  %v236_v62 = vsub.f32 %v1564_v14, %v1999_v58  ;;  %v349_v13 = vand.u32 4294901760, %v348_v41  ;;  %968 = vmatpush3.msra.mxu0 %v1553_v43  ;;  %v1632_v58 = vsub.f32 %v1460_v26, %v1494_v63  ;;  %s1158_s21 = scalar_lea.vmem %s931_s20, 256  ;;  %p1163_p1 = scmp.lt.s32.totalorder %s931_s20, %s931_s20 }
  0x22   :  { %992 = vmatprep.subr.mxu1 %v342_v19  ;;  %v355_v50 = vsub.f32 %v1581_v61, %v2000_v30  ;;  %969 = vmatprep.subr.mxu0 %v1567_v56  ;;  %v243_v41 = vsub.f32 %v1593_v1, %v2001_v20  ;;  %v1954_v19 = vand.u32 4294901760, %v1621_v53  ;;  %v1639_v47 = vand.u32 4294901760, %v1157_v7  ;;  %p1159_p0 = scmp.ne.s32.totalorder %s931_s20, %s1158_s21  ;;  %p1164_p2 = scmp.lt.s32.totalorder %s1158_s21, %s1158_s21 }
  0x23   :  { %993 = vmatpush3.msra.mxu1 %v230_v36  ;;  %v237_v32 = vand.u32 4294901760, %v236_v62  ;;  %970 = vmatpush3.msra.mxu0 %v1589_v38  ;;  %v1955_v61 = vand.u32 4294901760, %v1632_v58  ;;  %v1643_v26 = vand.u32 4294901760, %v1155_v52  ;;  %v1647_v36 = vsub.f32 %v1473_v27, %v1511_v39 }
  0x24   :  { %2002 = vst [vmem:[#allocation24_spill] sm:$0xff] %v1639_v47  ;;  %994 = vmatprep.subr.mxu1 %v349_v13  ;;  %v356_v30 = vand.u32 4294901760, %v355_v50  ;;  %v244_v62 = vand.u32 4294901760, %v243_v41  ;;  %971 = vmatprep.subr.mxu0 %v1609_v57  ;;  %v362_v20 = vsub.f32 %v1621_v53, %v1954_v19  ;;  %v1654_v13 = vsub.f32 %v1157_v7, %v1639_v47  ;;  %p1165_p3 = por %p1164_p2, %p1163_p1 }
  0x25   :  { %2003 = vst [vmem:[#allocation25_spill] sm:$0xff] %v1643_v26  ;;  %995 = vmatpush3.msra.mxu1 %v237_v32  ;;  %v1658_v50 = vsub.f32 %v1487_v49, %v1525_v54  ;;  %972 = vmatpush3.msra.mxu0 %v1628_v24  ;;  %v250_v32 = vsub.f32 %v1632_v58, %v1955_v61  ;;  %vm12_vm0 = vcmask 517120   ;;  %vm922_vm1 = vcmask 519168  }
  0x26   :  { %996 = vmatprep.subr.mxu1 %v356_v30  ;;  %v1666_v41 = vsub.f32 %v1155_v52, %v1643_v26  ;;  %v1670_v7 = vsub.f32 %v1503_v44, %v1541_v29  ;;  %v363_v19 = vand.u32 4294901760, %v362_v20  ;;  %v1960_v49 = vand.u32 4294901760, %v1654_v13  ;;  %1011 = vmatprep.subr.mxu0 %v1246_v18  ;;  %p1166_p4 = pnand %p1165_p3, %p1159_p0 }
  0x27   :  { %997 = vmatpush3.msra.mxu1 %v244_v62  ;;  %v1963_v30 = vand.u32 4294901760, %v1658_v50  ;;  %v1677_v61 = vsub.f32 %v1516_v37, %v1553_v43  ;;  %v251_v27 = vand.u32 4294901760, %v250_v32  ;;  %v2004_v52 = vand.u32 4294901760, %v1647_v36  ;;  %394 = vmatprep.mubr.f32.mxu1 %v1639_v47 }
  0x28   :  { %998 = vmatprep.subr.mxu1 %v363_v19  ;;  %v156_v20 = vsub.f32 %v1654_v13, %v1960_v49  ;;  %v2005_v62 = vand.u32 4294901760, %v1666_v41  ;;  %v2006_v47 = vand.u32 4294901760, %v1670_v7  ;;  %v1704_v43 = vsub.f32 %v1558_v51, %v1589_v38 }
  0x29   :  { %v369_v54 = vsub.f32 %v1647_v36, %v2004_v52  ;;  %v257_v37 = vsub.f32 %v1658_v50, %v1963_v30  ;;  %v1694_v52 = vsub.f32 %v1530_v33, %v1567_v56  ;;  %999 = vmatpush3.msra.mxu1 %v251_v27  ;;  %v2008_v29 = vand.u32 4294901760, %v1677_v61 }
  0x2a   :  { %v162_v19 = vsub.f32 %v1666_v41, %v2005_v62  ;;  %v376_v49 = vsub.f32 %v1670_v7, %v2006_v47  ;;  %2007 = vst [vmem:[#allocation26_spill] sm:$0xff] %v1704_v43  ;;  %v157_v30 = vand.u32 4294901760, %v156_v20  ;;  %v1970_v62 = vand.u32 4294901760, %v1704_v43 }
  0x2b   :  { %v370_v44 = vand.u32 4294901760, %v369_v54  ;;  %v258_v32 = vand.u32 4294901760, %v257_v37  ;;  %v264_v33 = vsub.f32 %v1677_v61, %v2008_v29  ;;  %v1971_v54 = vand.u32 4294901760, %v1694_v52 }
  0x2c   :  { %v163_v27 = vand.u32 4294901760, %v162_v19  ;;  %v377_v56 = vand.u32 4294901760, %v376_v49  ;;  %v1713_v47 = vsub.f32 %v1572_v12, %v1609_v57  ;;  %158 = vmatprep.mubr.f32.mxu0 %v157_v30  ;;  %v1720_v29 = vsub.f32 %v1598_v2, %v1628_v24 }
  0x2d   :  { %1000 = vmatprep.subr.mxu1 %v370_v44  ;;  %v265_v51 = vand.u32 4294901760, %v264_v33  ;;  %v383_v20 = vsub.f32 %v1694_v52, %v1971_v54  ;;  %v271_v49 = vsub.f32 %v1704_v43, %v1970_v62  ;;  %v2011_v33 = vld [vmem:[#allocation5_spill] sm:$0xff]  ;;  %v2025_v54 = vand.u32 4294901760, %v1246_v18 }
  0x2e   :  { %2009 = vst [vmem:[#allocation27_spill] sm:$0xff] %v1713_v47  ;;  %1001 = vmatpush3.msra.mxu1 %v258_v32  ;;  %2010 = vst [vmem:[#allocation28_spill] sm:$0xff] %v1720_v29  ;;  %164 = vmatmul.mubr.f32.vlgmr.msra.gmra.mxu0 %v163_v27  ;;  %v1969_v12 = vand.u32 4294901760, %v1713_v47  ;;  %v1968_v44 = vand.u32 4294901760, %v1720_v29  ;;  %v2012_v27 = vld [vmem:[#allocation6_spill] sm:$0xff]  ;;  %v2024_v62 = vld [vmem:[#allocation17_spill] sm:$0xff] }
  0x2f   :  { %1002 = vmatprep.subr.mxu1 %v377_v56  ;;  %1012 = vmatpush3.msra.mxu0 %v1268_v23  ;;  %v384_v30 = vand.u32 4294901760, %v383_v20  ;;  %v272_v37 = vand.u32 4294901760, %v271_v49  ;;  %v2014_v20 = vld [vmem:[#allocation7_spill] sm:$0xff]  ;;  %v2015_v49 = vld [vmem:[#allocation8_spill] sm:$0xff]  ;;  %v2033_v18 = vand.u32 4294901760, %v1306_v35 }
  0x30   :  { %1003 = vmatpush3.msra.mxu1 %v265_v51  ;;  %1013 = vmatprep.subr.mxu0 %v1274_v25  ;;  %v390_v2 = vsub.f32 %v1713_v47, %v1969_v12  ;;  %v278_v56 = vsub.f32 %v1720_v29, %v1968_v44  ;;  %v2013_v51 = vld [vmem:[#allocation23_spill] sm:$0xff]  ;;  %v2023_v12 = vld [vmem:[#allocation16_spill] sm:$0xff] }
  0x31   :  { %531 = vmatprep.mubr.f32.mxu0 %v1654_v13  ;;  %1014 = vmatpush3.msra.mxu0 %v1297_v31  ;;  %v2022_v44 = vld [vmem:[#allocation15_spill] sm:$0xff] }
  0x32   :  { %1004 = vmatprep.subr.mxu1 %v384_v30  ;;  %1015 = vmatprep.subr.mxu0 %v1306_v35  ;;  %v391_v32 = vand.u32 4294901760, %v390_v2  ;;  %v279_v19 = vand.u32 4294901760, %v278_v56  ;;  %v2016_v30 = vld [vmem:[#allocation9_spill] sm:$0xff]  ;;  %v2018_v2 = vld [vmem:[#allocation11_spill] sm:$0xff]  ;;  %v2019_v56 = vld [vmem:[#allocation12_spill] sm:$0xff]  ;;  %v2038_v35 = vand.u32 4294901760, %v1666_v41 }
  0x33   :  { %1005 = vmatpush3.msra.mxu1 %v272_v37  ;;  %1016 = vmatpush3.msra.mxu0 %v1322_v40  ;;  %v2017_v37 = vld [vmem:[#allocation10_spill] sm:$0xff] }
  0x34   :  { %1006 = vmatprep.subr.mxu1 %v391_v32  ;;  %1017 = vmatprep.subr.mxu0 %v1336_v45  ;;  %v2020_v32 = vld [vmem:[#allocation13_spill] sm:$0xff] }
  0x35   :  { %1007 = vmatpush3.msra.mxu1 %v279_v19  ;;  %1018 = vmatpush3.msra.mxu0 %v1371_v59  ;;  %v2021_v19 = vld [vmem:[#allocation14_spill] sm:$0xff] }
  0x36   :  { %396 = vmatmul.mubr.f32.vlgmr.msra.gmra.mxu1 %v1643_v26  ;;  %1019 = vmatprep.subr.mxu0 %v1386_v0  ;;  %v2026_v26 = vld [vmem:[#allocation19_spill] sm:$0xff] }
  0x37   :  { %1046 = vmatprep.subr.mxu1 %v1208_v3  ;;  %1020 = vmatpush3.msra.mxu0 %v1400_v8 }
  0x38   :  { %1047 = vmatpush3.msra.mxu1 %v1210_v4  ;;  %1021 = vmatprep.subr.mxu0 %v1414_v42 }
  0x39   :  { %1048 = vmatprep.subr.mxu1 %v1212_v5  ;;  %1022 = vmatpush3.msra.mxu0 %v1426_v48 }
  0x3a   :  { %1049 = vmatpush3.msra.mxu1 %v1223_v9  ;;  %1023 = vmatprep.subr.mxu0 %v1443_v21 }
  0x3b   :  { %1050 = vmatprep.subr.mxu1 %v1225_v10  ;;  %1024 = vmatpush3.msra.mxu0 %v1455_v6 }
  0x3c   :  { %1051 = vmatpush3.msra.mxu1 %v1227_v11  ;;  %1025 = vmatprep.subr.mxu0 %v1482_v55 }
  0x3d   :  { %1052 = vmatprep.subr.mxu1 %v1239_v15  ;;  %1026 = vmatpush3.msra.mxu0 %v1498_v28 }
  0x3e   :  { %1053 = vmatpush3.msra.mxu1 %v1241_v16  ;;  %1027 = vmatprep.subr.mxu0 %v1522_v34 }
  0x3f   :  { %1054 = vmatprep.subr.mxu1 %v1243_v17  ;;  %1028 = vmatpush3.msra.mxu0 %v1538_v46 }
  0x40   :  { %1055 = vmatpush3.msra.mxu1 %v1265_v22  ;;  %1029 = vmatprep.subr.mxu0 %v1550_v60 }
  0x41   :  { %1056 = vmatprep.subr.mxu1 %v2011_v33  ;;  %1030 = vmatpush3.msra.mxu0 %v1564_v14 }
  0x42   :  { %1057 = vmatpush3.msra.mxu1 %v2012_v27  ;;  %1031 = vmatprep.subr.mxu0 %v2013_v51 }
  0x43   :  { %1058 = vmatprep.subr.mxu1 %v2014_v20  ;;  %1032 = vmatpush3.msra.mxu0 %v1593_v1 }
  0x44   :  { %1059 = vmatpush3.msra.mxu1 %v2015_v49  ;;  %1033 = vmatprep.subr.mxu0 %v1621_v53 }
  0x45   :  { %1060 = vmatprep.subr.mxu1 %v2016_v30  ;;  %1034 = vmatpush3.msra.mxu0 %v1632_v58 }
  0x46   :  { %1061 = vmatpush3.msra.mxu1 %v2017_v37  ;;  %1035 = vmatprep.subr.mxu0 %v1647_v36 }
  0x47   :  { %1062 = vmatprep.subr.mxu1 %v2018_v2  ;;  %1036 = vmatpush3.msra.mxu0 %v1658_v50 }
  0x48   :  { %1063 = vmatpush3.msra.mxu1 %v2019_v56  ;;  %1037 = vmatprep.subr.mxu0 %v1670_v7 }
  0x49   :  { %1064 = vmatprep.subr.mxu1 %v2020_v32  ;;  %1038 = vmatpush3.msra.mxu0 %v1677_v61 }
  0x4a   :  { %1065 = vmatpush3.msra.mxu1 %v2021_v19  ;;  %1039 = vmatprep.subr.mxu0 %v1694_v52 }
  0x4b   :  { %1066 = vmatprep.subr.mxu1 %v2022_v44  ;;  %1040 = vmatpush3.msra.mxu0 %v1704_v43  ;;  %v2027_v43 = vand.u32 4294901760, %v1268_v23  ;;  %v2034_v23 = vand.u32 4294901760, %v1322_v40  ;;  %v2040_v40 = vand.u32 4294901760, %v1400_v8  ;;  %v2057_v8 = vand.u32 4294901760, %v1670_v7 }
  0x4c   :  { %1067 = vmatpush3.msra.mxu1 %v2023_v12  ;;  %1041 = vmatprep.subr.mxu0 %v1713_v47  ;;  %v2028_v12 = vld [vmem:[#allocation20_spill] sm:$0xff]  ;;  %v2032_v47 = vld [vmem:[#allocation22_spill] sm:$0xff] }
  0x4d   :  { %1068 = vmatprep.subr.mxu1 %v2024_v62  ;;  %1042 = vmatpush3.msra.mxu0 %v1720_v29  ;;  %v2029_v62 = vand.u32 4294901760, %v1274_v25  ;;  %v2030_v29 = vld [vmem:[#allocation21_spill] sm:$0xff]  ;;  %v2035_v25 = vand.u32 4294901760, %v1336_v45  ;;  %v2041_v45 = vand.u32 4294901760, %v1414_v42  ;;  %v2058_v42 = vand.u32 4294901760, %v1677_v61 }
  0x4e   :  { %1069 = vmatpush3.msra.mxu1 %v1494_v63  ;;  %534 = vmatmul.mubr.f32.vlgmr.msra.gmra.mxu0 %v1666_v41  ;;  %v2031_v63 = vand.u32 4294901760, %v1297_v31  ;;  %v2036_v31 = vand.u32 4294901760, %v1654_v13  ;;  %v2070_v13 = vld [vmem:[#allocation25_spill] sm:$0xff] }
  0x4f   :  { %1070 = vmatprep.subr.mxu1 %v1511_v39  ;;  %1081 = vmatprep.subr.mxu0 %v2025_v54 }
  0x50   :  { %1071 = vmatpush3.msra.mxu1 %v2026_v26  ;;  %1082 = vmatpush3.msra.mxu0 %v2027_v43  ;;  %v2039_v43 = vand.u32 4294901760, %v1386_v0  ;;  %v2043_v0 = vand.u32 4294901760, %v1443_v21  ;;  %v2060_v21 = vld [vmem:[#allocation26_spill] sm:$0xff] }
  0x51   :  { %1072 = vmatprep.subr.mxu1 %v2028_v12  ;;  %1083 = vmatprep.subr.mxu0 %v2029_v62 }
  0x52   :  { %1073 = vmatpush3.msra.mxu1 %v2030_v29  ;;  %1084 = vmatpush3.msra.mxu0 %v2031_v63  ;;  %v2037_v63 = vand.u32 4294901760, %v1371_v59  ;;  %v2042_v59 = vand.u32 4294901760, %v1426_v48  ;;  %v2059_v48 = vand.u32 4294901760, %v1694_v52 }
  0x53   :  { %1074 = vmatprep.subr.mxu1 %v2032_v47  ;;  %1085 = vmatprep.subr.mxu0 %v2033_v18 }
  0x54   :  { %1075 = vmatpush3.msra.mxu1 %v1589_v38  ;;  %1086 = vmatpush3.msra.mxu0 %v2034_v23 }
  0x55   :  { %1076 = vmatprep.subr.mxu1 %v1609_v57  ;;  %1087 = vmatprep.subr.mxu0 %v2035_v25 }
  0x56   :  { %1077 = vmatpush3.msra.mxu1 %v1628_v24  ;;  %638 = vmatprep.mubr.f32.mxu1 %v2036_v31 }
  0x57   :  { %1088 = vmatpush3.msra.mxu0 %v2037_v63  ;;  %642 = vmatmul.mubr.f32.vlgmr.msra.gmra.mxu1 %v2038_v35 }
  0x58   :  { %1089 = vmatprep.subr.mxu0 %v2039_v43  ;;  %1116 = vmatprep.subr.mxu1 %v1208_v3  ;;  %v2044_v3 = vand.u32 4294901760, %v1455_v6  ;;  %v2061_v6 = vand.u32 4294901760, %v2060_v21 }
  0x59   :  { %1090 = vmatpush3.msra.mxu0 %v2040_v40  ;;  %1117 = vmatpush3.msra.mxu1 %v1210_v4  ;;  %v2045_v4 = vand.u32 4294901760, %v1482_v55  ;;  %v2055_v55 = vand.u32 4294901760, %v1647_v36  ;;  %v2069_v36 = vld [vmem:[#allocation18_spill] sm:$0xff] }
  0x5a   :  { %1091 = vmatprep.subr.mxu0 %v2041_v45  ;;  %1118 = vmatprep.subr.mxu1 %v1212_v5  ;;  %v2046_v5 = vand.u32 4294901760, %v1498_v28  ;;  %v2062_v28 = vld [vmem:[#allocation16_spill] sm:$0xff] }
  0x5b   :  { %1092 = vmatpush3.msra.mxu0 %v2042_v59  ;;  %1119 = vmatpush3.msra.mxu1 %v1223_v9  ;;  %v2047_v9 = vand.u32 4294901760, %v1522_v34  ;;  %v2054_v34 = vand.u32 4294901760, %v1632_v58  ;;  %v2068_v58 = vld [vmem:[#allocation24_spill] sm:$0xff] }
  0x5c   :  { %1093 = vmatprep.subr.mxu0 %v2043_v0  ;;  %1120 = vmatprep.subr.mxu1 %v1225_v10  ;;  %v2048_v10 = vand.u32 4294901760, %v1538_v46 }
  0x5d   :  { %1094 = vmatpush3.msra.mxu0 %v2044_v3  ;;  %1121 = vmatpush3.msra.mxu1 %v1227_v11  ;;  %v2049_v11 = vand.u32 4294901760, %v1550_v60  ;;  %v2056_v60 = vand.u32 4294901760, %v1658_v50 }
  0x5e   :  { %1095 = vmatprep.subr.mxu0 %v2045_v4  ;;  %1122 = vmatprep.subr.mxu1 %v1239_v15  ;;  %v2050_v15 = vand.u32 4294901760, %v1564_v14  ;;  %v2065_v14 = vld [vmem:[#allocation17_spill] sm:$0xff] }
  0x5f   :  { %1096 = vmatpush3.msra.mxu0 %v2046_v5  ;;  %1123 = vmatpush3.msra.mxu1 %v1241_v16  ;;  %v2051_v16 = vand.u32 4294901760, %v2013_v51 }
  0x60   :  { %1097 = vmatprep.subr.mxu0 %v2047_v9  ;;  %1124 = vmatprep.subr.mxu1 %v1243_v17  ;;  %v2052_v17 = vand.u32 4294901760, %v1593_v1  ;;  %v2066_v1 = vld [vmem:[#allocation28_spill] sm:$0xff] }
  0x61   :  { %1098 = vmatpush3.msra.mxu0 %v2048_v10  ;;  %1125 = vmatpush3.msra.mxu1 %v1265_v22  ;;  %v2053_v22 = vand.u32 4294901760, %v1621_v53  ;;  %v2063_v53 = vld [vmem:[#allocation27_spill] sm:$0xff]  ;;  %v2067_v61 = vand.u32 4294901760, %v2066_v1 }
  0x62   :  { %1099 = vmatprep.subr.mxu0 %v2049_v11  ;;  %1126 = vmatprep.subr.mxu1 %v2011_v33  ;;  %v2064_v46 = vand.u32 4294901760, %v2063_v53 }
  0x63   :  { %1100 = vmatpush3.msra.mxu0 %v2050_v15  ;;  %1127 = vmatpush3.msra.mxu1 %v2012_v27 }
  0x64   :  { %1101 = vmatprep.subr.mxu0 %v2051_v16  ;;  %1128 = vmatprep.subr.mxu1 %v2014_v20 }
  0x65   :  { %1102 = vmatpush3.msra.mxu0 %v2052_v17  ;;  %1129 = vmatpush3.msra.mxu1 %v2015_v49 }
  0x66   :  { %1103 = vmatprep.subr.mxu0 %v2053_v22  ;;  %1130 = vmatprep.subr.mxu1 %v2016_v30 }
  0x67   :  { %1104 = vmatpush3.msra.mxu0 %v2054_v34  ;;  %1131 = vmatpush3.msra.mxu1 %v2017_v37 }
  0x68   :  { %1105 = vmatprep.subr.mxu0 %v2055_v55  ;;  %1132 = vmatprep.subr.mxu1 %v2018_v2 }
  0x69   :  { %1106 = vmatpush3.msra.mxu0 %v2056_v60  ;;  %1133 = vmatpush3.msra.mxu1 %v2019_v56 }
  0x6a   :  { %1107 = vmatprep.subr.mxu0 %v2057_v8  ;;  %1134 = vmatprep.subr.mxu1 %v2020_v32 }
  0x6b   :  { %1108 = vmatpush3.msra.mxu0 %v2058_v42  ;;  %1135 = vmatpush3.msra.mxu1 %v2021_v19 }
  0x6c   :  { %1109 = vmatprep.subr.mxu0 %v2059_v48  ;;  %1136 = vmatprep.subr.mxu1 %v2022_v44 }
  0x6d   :  { %1110 = vmatpush3.msra.mxu0 %v2061_v6  ;;  %1137 = vmatpush3.msra.mxu1 %v2062_v28 }
  0x6e   :  { %1111 = vmatprep.subr.mxu0 %v2064_v46  ;;  %1138 = vmatprep.subr.mxu1 %v2065_v14 }
  0x6f   :  { %1112 = vmatpush3.msra.mxu0 %v2067_v61  ;;  %808 = vmatprep.mubr.f32.mxu0 %v2068_v58 }
  0x70   :  { %1139 = vmatpush3.msra.mxu1 %v2069_v36  ;;  %810 = vmatmul.mubr.f32.vlgmr.msra.gmra.mxu0 %v2070_v13 }
  0x71   :  { %1140 = vmatprep.subr.mxu1 %v1511_v39  ;;  %912 = vmatprep.mubr.f32.mxu1 %v2068_v58  ;;  %v1180_v39 = vmov 0.0  }
  0x72   :  { %1141 = vmatpush3.msra.mxu1 %v2026_v26  ;;  %13 = vst.msk [vmem:[#allocation2] sm:$0x3] %vm12_vm0, %v1180_v39  ;;  %14 = vst.msk [vmem:[#allocation2 + $0x8] sm:$0x3] %vm12_vm0, %v1180_v39 }
  0x73   :  { %1142 = vmatprep.subr.mxu1 %v2028_v12  ;;  %15 = vst.msk [vmem:[#allocation2 + $0x6] sm:$0x3] %vm12_vm0, %v1180_v39  ;;  %16 = vst.msk [vmem:[#allocation2 + $0xe] sm:$0x3] %vm12_vm0, %v1180_v39 }
  0x74   :  { %1143 = vmatpush3.msra.mxu1 %v2030_v29 }
  0x75   :  { %1144 = vmatprep.subr.mxu1 %v2032_v47 }
  0x76   :  { %1145 = vmatpush3.msra.mxu1 %v1589_v38 }
  0x77   :  { %1146 = vmatprep.subr.mxu1 %v1609_v57 }
  0x78   :  { %1147 = vmatpush3.msra.mxu1 %v1628_v24 }
  0x79   :  { %914 = vmatmul.mubr.f32.vlgmr.msra.gmra.mxu1 %v2070_v13 }
  0xee   :  { %v973_v26 = vpop.f32.mrf.mxu0 }
  0xf0   :  { %v974_v50 = vpop.f32.mrf.mxu0 }
  0xf1   :  { %v975_v29 = vadd.f32 %v974_v50, %v973_v26 }
  0xf6   :  { %v1008_v41 = vpop.f32.mrf.mxu1 }
  0xf8   :  { %v1009_v52 = vpop.f32.mrf.mxu1 }
  0xf9   :  { %v1010_v47 = vadd.f32 %v1009_v52, %v1008_v41 }
  0xfb   :  { %v398_v44 = vadd.f32 %v1010_v47, %v975_v29 }
 0x10e   :  { %v1043_v7 = vpop.f32.mrf.mxu0 }
 0x110   :  { %v1044_v54 = vpop.f32.mrf.mxu0 }
 0x111   :  { %v1045_v24 = vadd.f32 %v1044_v54, %v1043_v7 }
 0x113   :  { %v536_v27 = vadd.f32 %v1045_v24, %v398_v44 }
 0x117   :  { %v1078_v62 = vpop.f32.mrf.mxu1 }
 0x119   :  { %v1079_v57 = vpop.f32.mrf.mxu1 }
 0x11a   :  { %v1080_v33 = vadd.f32 %v1079_v57, %v1078_v62 }
 0x11c   :  { %v644_v49 = vadd.f32 %v1080_v33, %v536_v27 }
 0x130   :  { %v1113_v38 = vpop.f32.mrf.mxu0 }
 0x132   :  { %v1114_v12 = vpop.f32.mrf.mxu0 }
 0x133   :  { %v1115_v51 = vadd.f32 %v1114_v12, %v1113_v38 }
 0x135   :  { %v812_v37 = vadd.f32 %v1115_v51, %v644_v49 }
 0x139   :  { %v1148_v20 = vpop.f32.mrf.mxu1 }
 0x13b   :  { %v1149_v30 = vpop.f32.mrf.mxu1 }
 0x13c   :  { %v1150_v2 = vadd.f32 %v1149_v30, %v1148_v20 }
 0x13e   :  { %v916_v56 = vadd.f32 %v1150_v2, %v812_v37 }
 0x140   :  { %v920_v32 = vcombine.high %v916_v56, %v916_v56  ;;  %923 = vst.msk [vmem:[#allocation2 + $0x2] sm:$0xf] %vm922_vm1, %v916_v56 }
 0x142   :  { %924 = vst.msk [vmem:[#allocation2 + $0xa] sm:$0xf] %vm922_vm1, %v920_v32 }
 0x143   :  { %1169 = shalt.err (!%p1166_p4)
}
 0x144   :  { %s1182_s22 = smov 128   ;;  %s1183_s23 = smov 8  }
 0x145   :  { %936 = dma.vmem_to_hbm [thread:$0]  %s931_s20, 256, %s1908_s2, [#allocation3], %s1182_s22, %s1182_s22, %s1183_s23  }
 0x146   :  { %1178 = dma.done.wait [#allocation3], 256  }
 0x147   :  { %1179 = vsyncadd [#allocation3], 4294967040 }
 0x148   :  { %940 = vsyncpa [#allocation3], 1 }

</bundles_post_ra>
